<compile_context>
chip_gen: v5e
topology: v5e:2x2
jax: 0.10.0
libtpu: 0.0.40
codegen_flags: <defaults>
</compile_context>

<pallas_src>
import jax
import jax.numpy as jnp
from jax import lax
from jax.experimental import pallas as pl
from jax.experimental.pallas import tpu as pltpu

SCALE_WSI = 80.0
LN_EPS = 1e-5  # PyTorch nn.LayerNorm default


# ---------------------------------------------------------------------------
# Generation-aware tiling defaults.
# ---------------------------------------------------------------------------
def _device_defaults():
    kind = ""
    try:
        kind = jax.devices()[0].device_kind.lower()
    except Exception:
        pass
    if "v7" in kind:   # 64 MiB VMEM/TC, 3.2 TB/s HBM -> compute-bound at Tq=256
        return dict(q_tile=256, kv_tile=512, ln_tile=256,
                    vmem=48 * 1024 * 1024, bf16_eup=True)
    if "v6" in kind:   # 128 MiB VMEM, bf16 EUP -> bigger q tile flips compute-bound
        return dict(q_tile=512, kv_tile=512, ln_tile=256,
                    vmem=80 * 1024 * 1024, bf16_eup=True)
    if "v5" in kind:   # most re-stream sensitive; no bf16 EUP
        return dict(q_tile=512, kv_tile=512, ln_tile=256,
                    vmem=64 * 1024 * 1024, bf16_eup=False)
    return dict(q_tile=256, kv_tile=512, ln_tile=256,
                vmem=32 * 1024 * 1024, bf16_eup=True)


def _pick_tile(n, target):
    """Largest tile <= target that divides n and is a multiple of 8 (or n)."""
    target = max(8, (target // 8) * 8)
    if n <= target:
        return n
    t = target
    while t >= 8:
        if n % t == 0:
            return t
        t -= 8
    return n


# ---------------------------------------------------------------------------
# Kernel 1: LayerNorm + QKV projection -> head-major q/k (B,H,N,hd) and
# ones-augmented v (B,H,N,hd+1).
# ---------------------------------------------------------------------------
def _make_ln_qkv_kernel(C, num_heads):
    hd = C // num_heads
    hdv = hd + 1

    def kernel(x_ref, gamma_ref, beta_ref, wqkv_ref, q_ref, k_ref, v_ref):
        x = x_ref[0]                                        # (Tn, C) f32
        mean = jnp.mean(x, axis=-1, keepdims=True)
        xc = x - mean
        var = jnp.mean(xc * xc, axis=-1, keepdims=True)     # biased var (PyTorch)
        xn = xc * lax.rsqrt(var + LN_EPS)
        xn = xn * gamma_ref[...] + beta_ref[...]            # (Tn, C) f32

        # Q columns of wqkv already carry scale * 80 (folded in the wrapper).
        qkv = jnp.dot(xn.astype(wqkv_ref.dtype), wqkv_ref[...],
                      preferred_element_type=jnp.float32)   # (Tn, 3C) f32

        Tn = x.shape[0]
        ones_col = jnp.ones((Tn, 1), v_ref.dtype)           # softmax-denominator column
        # Single relayout to head-major layout, amortized once per token tile
        # (the attention kernel never lane-slices per head).
        for h in range(num_heads):
            lo = h * hd
            hi = lo + hd
            q_ref[0, h] = qkv[:, 0 * C + lo:0 * C + hi].astype(q_ref.dtype)
            k_ref[0, h] = qkv[:, 1 * C + lo:1 * C + hi].astype(k_ref.dtype)
            v_ref[0, h, :, :hd] = qkv[:, 2 * C + lo:2 * C + hi].astype(v_ref.dtype)
            v_ref[0, h, :, hd:hdv] = ones_col               # constant 1 column

    return kernel


# ---------------------------------------------------------------------------
# Kernel 2: flash-style attention (online softmax over kv tiles) with the
# head-concat folded into the output projection.
# grid = (B, q_tiles, heads, kv_tiles); output block (1, Tq, C) is resident
# across the (head, kv) reduction axes.
# Scratch: m_s (Tq,1) running max; acc_s (Tq, hd+1) unnormalized context whose
# last column is the softmax denominator (ones-column trick); out_acc (Tq, C).
# ---------------------------------------------------------------------------
def _make_attn_proj_kernel(hd, use_bf16_p):
    hdv = hd + 1
    p_dtype = jnp.bfloat16 if use_bf16_p else jnp.float32

    def kernel(q_ref, k_ref, v_ref, wproj_ref, bproj_ref, o_ref,
               m_s, acc_s, out_acc):
        h = pl.program_id(2)
        ki = pl.program_id(3)
        nh = pl.num_programs(2)
        nk = pl.num_programs(3)

        @pl.when((h == 0) & (ki == 0))
        def _():
            out_acc[...] = jnp.zeros_like(out_acc)

        @pl.when(ki == 0)
        def _():
            m_s[...] = jnp.full_like(m_s, -jnp.inf)
            acc_s[...] = jnp.zeros_like(acc_s)

        q = q_ref[0, 0]                                      # (Tq, hd), pre-scaled
        k = k_ref[0, 0]                                      # (Tk, hd)
        v = v_ref[0, 0]                                      # (Tk, hd+1), last col = 1

        # Scores in f32 (keeps the max-subtraction stability margin with the
        # large *80 logits); contract the last dims directly.
        s = lax.dot_general(q, k, (((1,), (1,)), ((), ())),
                            preferred_element_type=jnp.float32)  # (Tq, Tk)

        m_prev = m_s[...]
        m_new = jnp.maximum(m_prev, jnp.max(s, axis=-1, keepdims=True))
        alpha = jnp.exp(m_prev - m_new)                      # f32 rescale factor
        # Probabilities: bf16 exp on bf16-EUP generations, f32 otherwise.
        p = jnp.exp((s - m_new).astype(p_dtype))             # (Tq, Tk), unnormalized
        # P @ [V | 1]: column hd of the product is sum(p) -> free row-sum.
        pv = jnp.dot(p.astype(v.dtype), v,
                     preferred_element_type=jnp.float32)     # (Tq, hd+1)
        acc_s[...] = alpha * acc_s[...] + pv
        m_s[...] = m_new

        @pl.when(ki == nk - 1)
        def _():
            # Deferred softmax normalization; denominator rides in the last
            # column of the accumulator, reciprocal goes to the EUP slot.
            l = acc_s[:, hd:hdv]                             # (Tq, 1)
            inv_l = pl.reciprocal(l, approx=True)
            ctx = acc_s[:, :hd] * inv_l                      # (Tq, hd)
            # Fold this head's slice of the concat directly into the projection.
            out_acc[...] += jnp.dot(ctx.astype(wproj_ref.dtype), wproj_ref[0],
                                    preferred_element_type=jnp.float32)

        @pl.when((h == nh - 1) & (ki == nk - 1))
        def _():
            o_ref[0] = (out_acc[...] + bproj_ref[...]).astype(o_ref.dtype)

    return kernel


# ---------------------------------------------------------------------------
# Wrapper
# ---------------------------------------------------------------------------
def attention_wsi(x, params, num_heads, *, mm_dtype=jnp.bfloat16,
                  q_tile=None, kv_tile=None, ln_tile=None, vmem_limit=None):
    """x: (B, N, C) float32. params: dict of weights (see init_params)."""
    B, N, C = x.shape
    H = num_heads
    hd = C // H
    hdv = hd + 1
    assert H * hd == C, "dim must be divisible by num_heads"
    full_scale = (hd ** -0.5) * SCALE_WSI
    mm_dtype = jnp.dtype(mm_dtype)

    d = _device_defaults()
    q_tile = d["q_tile"] if q_tile is None else q_tile
    kv_tile = d["kv_tile"] if kv_tile is None else kv_tile
    ln_tile = d["ln_tile"] if ln_tile is None else ln_tile
    vmem_limit = d["vmem"] if vmem_limit is None else vmem_limit
    use_bf16_p = (mm_dtype == jnp.bfloat16) and d["bf16_eup"]

    Tn = _pick_tile(N, ln_tile)    # rows per LN+QKV step
    Tq = _pick_tile(N, q_tile)     # query rows per attention step
    Tk = _pick_tile(N, kv_tile)    # key/value rows per attention step

    # Fold the attention scale (head_dim^-0.5 * 80) into the Q columns of the
    # QKV weight (zero in-kernel cost); keep weights/intermediates in bf16.
    w_qkv = params["w_qkv"].astype(jnp.float32)
    w_qkv = w_qkv.at[:, :C].multiply(full_scale).astype(mm_dtype)
    gamma = params["ln_gamma"].reshape(1, C).astype(jnp.float32)
    beta = params["ln_beta"].reshape(1, C).astype(jnp.float32)
    # (C, C) -> (H, hd, C): per-head row slabs so the head concat becomes a
    # sum over heads inside the attention kernel.
    w_proj = params["w_proj"].reshape(H, hd, C).astype(mm_dtype)
    b_proj = params["b_proj"].reshape(1, C).astype(jnp.float32)

    # ---- kernel 1: LayerNorm + QKV -> head-major q/k, ones-augmented v -----
    qk_shape = jax.ShapeDtypeStruct((B, H, N, hd), mm_dtype)
    v_shape = jax.ShapeDtypeStruct((B, H, N, hdv), mm_dtype)
    q, k, v = pl.pallas_call(
        _make_ln_qkv_kernel(C, H),
        out_shape=(qk_shape, qk_shape, v_shape),
        grid_spec=pltpu.PrefetchScalarGridSpec(
            num_scalar_prefetch=0,
            grid=(B, N // Tn),
            in_specs=[
                pl.BlockSpec((1, Tn, C), lambda b, t: (b, t, 0)),      # x
                pl.BlockSpec((1, C), lambda b, t: (0, 0)),             # ln gamma
                pl.BlockSpec((1, C), lambda b, t: (0, 0)),             # ln beta
                pl.BlockSpec((C, 3 * C), lambda b, t: (0, 0)),         # w_qkv (bf16)
            ],
            out_specs=(
                pl.BlockSpec((1, H, Tn, hd), lambda b, t: (b, 0, t, 0)),
                pl.BlockSpec((1, H, Tn, hd), lambda b, t: (b, 0, t, 0)),
                pl.BlockSpec((1, H, Tn, hdv), lambda b, t: (b, 0, t, 0)),
            ),
        ),
        compiler_params=pltpu.CompilerParams(
            dimension_semantics=("parallel", "parallel"),
            vmem_limit_bytes=vmem_limit),
    )(x, gamma, beta, w_qkv)

    # ---- kernel 2: tiled flash attention + fused output projection ---------
    out = pl.pallas_call(
        _make_attn_proj_kernel(hd, use_bf16_p),
        out_shape=jax.ShapeDtypeStruct((B, N, C), x.dtype),
        grid_spec=pltpu.PrefetchScalarGridSpec(
            num_scalar_prefetch=0,
            grid=(B, N // Tq, H, N // Tk),
            in_specs=[
                pl.BlockSpec((1, 1, Tq, hd), lambda b, qi, h, ki: (b, h, qi, 0)),
                pl.BlockSpec((1, 1, Tk, hd), lambda b, qi, h, ki: (b, h, ki, 0)),
                pl.BlockSpec((1, 1, Tk, hdv), lambda b, qi, h, ki: (b, h, ki, 0)),
                pl.BlockSpec((1, hd, C), lambda b, qi, h, ki: (h, 0, 0)),
                pl.BlockSpec((1, C), lambda b, qi, h, ki: (0, 0)),
            ],
            out_specs=pl.BlockSpec((1, Tq, C), lambda b, qi, h, ki: (b, qi, 0)),
            scratch_shapes=[
                pltpu.VMEM((Tq, 1), jnp.float32),      # running row max
                pltpu.VMEM((Tq, hdv), jnp.float32),    # unnormalized ctx + denom col
                pltpu.VMEM((Tq, C), jnp.float32),      # output accum over heads
            ],
        ),
        compiler_params=pltpu.CompilerParams(
            dimension_semantics=("parallel", "parallel", "arbitrary", "arbitrary"),
            vmem_limit_bytes=vmem_limit),
    )(q, k, v, w_proj, b_proj)
    return out


# ---------------------------------------------------------------------------
# Synthetic params + pure-JAX reference (mirrors the PyTorch forward exactly).
# ---------------------------------------------------------------------------
def init_params(key, C):
    k1, k2, k3 = jax.random.split(key, 3)
    return {
        # nn.LayerNorm(dim): weight=1, bias=0 at init
        "ln_gamma": jnp.ones((C,), jnp.float32),
        "ln_beta": jnp.zeros((C,), jnp.float32),
        # nn.Linear(dim, 3*dim, bias=False): stored (in, out) so kernel does x @ W.
        "w_qkv": (0.02 * jax.random.normal(k1, (C, 3 * C))).astype(jnp.float32),
        # nn.Linear(dim, dim) with bias.
        "w_proj": (0.02 * jax.random.normal(k2, (C, C))).astype(jnp.float32),
        "b_proj": (0.01 * jax.random.normal(k3, (C,))).astype(jnp.float32),
    }


def attention_wsi_reference(x, params, num_heads):
    B, N, C = x.shape
    head_dim = C // num_heads
    scale = head_dim ** (-0.5)

    mean = jnp.mean(x, axis=-1, keepdims=True)
    var = jnp.mean((x - mean) ** 2, axis=-1, keepdims=True)
    xn = (x - mean) / jnp.sqrt(var + LN_EPS)
    xn = xn * params["ln_gamma"] + params["ln_beta"]

    qkv = xn @ params["w_qkv"]                                    # (B, N, 3C)
    qkv = qkv.reshape(B, N, 3, num_heads, head_dim).transpose(2, 0, 3, 1, 4)
    q, k, v = qkv[0], qkv[1], qkv[2]                              # (B, H, N, hd)

    attn = jnp.einsum("bhnd,bhmd->bhnm", q, k) * scale * SCALE_WSI
    attn = jax.nn.softmax(attn, axis=-1)
    out = jnp.einsum("bhnm,bhmd->bhnd", attn, v)                  # (B, H, N, hd)
    out = out.transpose(0, 2, 1, 3).reshape(B, N, C)
    # attn_drop / proj_drop ratios are 0.0 -> identity
    return out @ params["w_proj"] + params["b_proj"]


if __name__ == "__main__":
    # Small shapes consistent with the module's forward: B=2, N=8 tokens, C=32.
    # NOTE: at this toy size (C=32 < 128 lanes, hd=4) the kernel is entirely
    # padding/overhead dominated; the tiling targets realistic WSI shapes.
    B, N, C = 2, 8, 32
    num_heads = 8

    key = jax.random.PRNGKey(0)
    kx, kp = jax.random.split(key)
    x = jax.random.normal(kx, (B, N, C), dtype=jnp.float32)
    params = init_params(kp, C)

    ref = attention_wsi_reference(x, params, num_heads)

    # Default (bf16 intermediates + bf16 MXU/EUP where available).
    out_bf = jax.block_until_ready(attention_wsi(x, params, num_heads))
    assert out_bf.shape == (B, N, C)
    err_bf = float(jnp.max(jnp.abs(out_bf.astype(jnp.float32) - ref)))
    assert jnp.allclose(out_bf.astype(jnp.float32), ref, atol=2e-2, rtol=2e-1), (
        f"bf16 max abs err = {err_bf}")

    # f32 path: tight parity check (approx reciprocal slightly loosens tolerance).
    out_f32 = jax.block_until_ready(
        attention_wsi(x, params, num_heads, mm_dtype=jnp.float32))
    err = float(jnp.max(jnp.abs(out_f32 - ref)))
    assert jnp.allclose(out_f32, ref, atol=2e-3, rtol=2e-2), f"f32 max abs err = {err}"

    print("KERNEL_OK")
</pallas_src>

<mosaic_0001>
module attributes {stable_mosaic.version = 11 : i64} {
  func.func @kernel(%arg0: i32, %arg1: i32, %arg2: memref<1x8x32xf32, #tpu.memory_space<vmem>>, %arg3: memref<1x32xf32, #tpu.memory_space<vmem>>, %arg4: memref<1x32xf32, #tpu.memory_space<vmem>>, %arg5: memref<32x96xbf16, #tpu.memory_space<vmem>>, %arg6: memref<1x8x8x4xbf16, #tpu.memory_space<vmem>>, %arg7: memref<1x8x8x4xbf16, #tpu.memory_space<vmem>>, %arg8: memref<1x8x8x5xbf16, #tpu.memory_space<vmem>>) attributes {dimension_semantics = [#tpu.dimension_semantics<parallel>, #tpu.dimension_semantics<parallel>], iteration_bounds = array<i64: 2, 1>, scalar_prefetch = 0 : i64, scratch_operands = 0 : i64, tpu.core_type = #tpu.core_type<tc>, window_params = [{transform_indices = @transform_0, window_bounds = array<i64: 1, 8, 32>}, {pipeline_mode = #tpu.pipeline_mode<synchronous>, transform_indices = @transform_1, window_bounds = array<i64: 1, 32>}, {pipeline_mode = #tpu.pipeline_mode<synchronous>, transform_indices = @transform_2, window_bounds = array<i64: 1, 32>}, {pipeline_mode = #tpu.pipeline_mode<synchronous>, transform_indices = @transform_3, window_bounds = array<i64: 32, 96>}, {transform_indices = @transform_4, window_bounds = array<i64: 1, 8, 8, 4>}, {transform_indices = @transform_5, window_bounds = array<i64: 1, 8, 8, 4>}, {transform_indices = @transform_6, window_bounds = array<i64: 1, 8, 8, 5>}]} {
    %c0 = arith.constant 0 : index
    %c0_0 = arith.constant 0 : index
    %c0_1 = arith.constant 0 : index
    %0 = vector.load %arg2[%c0, %c0_0, %c0_1] : memref<1x8x32xf32, #tpu.memory_space<vmem>>, vector<1x8x32xf32>
    %1 = vector.shape_cast %0 : vector<1x8x32xf32> to vector<8x32xf32>
    %cst = arith.constant dense<0.000000e+00> : vector<8xf32>
    %2 = vector.multi_reduction <add>, %1, %cst [1] : vector<8x32xf32> to vector<8xf32>
    %3 = vector.shape_cast %2 : vector<8xf32> to vector<8x1xf32>
    %cst_2 = arith.constant 3.200000e+01 : f32
    %4 = vector.broadcast %cst_2 : f32 to vector<8x1xf32>
    %5 = arith.divf %3, %4 : vector<8x1xf32>
    %6 = vector.broadcast %5 : vector<8x1xf32> to vector<8x32xf32>
    %7 = arith.subf %1, %6 : vector<8x32xf32>
    %8 = arith.mulf %7, %7 : vector<8x32xf32>
    %cst_3 = arith.constant dense<0.000000e+00> : vector<8xf32>
    %9 = vector.multi_reduction <add>, %8, %cst_3 [1] : vector<8x32xf32> to vector<8xf32>
    %10 = vector.shape_cast %9 : vector<8xf32> to vector<8x1xf32>
    %cst_4 = arith.constant 3.200000e+01 : f32
    %11 = vector.broadcast %cst_4 : f32 to vector<8x1xf32>
    %12 = arith.divf %10, %11 : vector<8x1xf32>
    %cst_5 = arith.constant 9.99999974E-6 : f32
    %13 = vector.broadcast %cst_5 : f32 to vector<8x1xf32>
    %14 = arith.addf %12, %13 : vector<8x1xf32>
    %15 = math.rsqrt %14 : vector<8x1xf32>
    %16 = vector.broadcast %15 : vector<8x1xf32> to vector<8x32xf32>
    %17 = arith.mulf %7, %16 : vector<8x32xf32>
    %c0_6 = arith.constant 0 : index
    %c0_7 = arith.constant 0 : index
    %18 = vector.load %arg3[%c0_6, %c0_7] : memref<1x32xf32, #tpu.memory_space<vmem>>, vector<1x32xf32>
    %19 = vector.broadcast %18 : vector<1x32xf32> to vector<8x32xf32>
    %20 = arith.mulf %17, %19 : vector<8x32xf32>
    %c0_8 = arith.constant 0 : index
    %c0_9 = arith.constant 0 : index
    %21 = vector.load %arg4[%c0_8, %c0_9] : memref<1x32xf32, #tpu.memory_space<vmem>>, vector<1x32xf32>
    %22 = vector.broadcast %21 : vector<1x32xf32> to vector<8x32xf32>
    %23 = arith.addf %20, %22 : vector<8x32xf32>
    %24 = arith.truncf %23 : vector<8x32xf32> to vector<8x32xbf16>
    %c0_10 = arith.constant 0 : index
    %c0_11 = arith.constant 0 : index
    %25 = vector.load %arg5[%c0_10, %c0_11] : memref<32x96xbf16, #tpu.memory_space<vmem>>, vector<32x96xbf16>
    %cst_12 = arith.constant dense<0.000000e+00> : vector<8x96xf32>
    %26 = tpu.matmul %24, %25, %cst_12 {dimension_numbers = #tpu.dot_dimension_numbers<[1], [0], [0], [1], [0, 0, 1, 1], [], []>} : vector<8x32xbf16>, vector<32x96xbf16>, vector<8x96xf32> -> vector<8x96xf32>
    %cst_13 = arith.constant 1.000000e+00 : bf16
    %27 = vector.broadcast %cst_13 : bf16 to vector<8x1xbf16>
    %28 = vector.extract_strided_slice %26 {offsets = [0, 0], sizes = [8, 4], strides = [1, 1]} : vector<8x96xf32> to vector<8x4xf32>
    %29 = arith.truncf %28 : vector<8x4xf32> to vector<8x4xbf16>
    %c0_14 = arith.constant 0 : index
    %c0_15 = arith.constant 0 : index
    %c0_16 = arith.constant 0 : index
    %c0_17 = arith.constant 0 : index
    %30 = vector.load %arg6[%c0_14, %c0_15, %c0_16, %c0_17] : memref<1x8x8x4xbf16, #tpu.memory_space<vmem>>, vector<1x1x8x4xbf16>
    %31 = vector.shape_cast %30 : vector<1x1x8x4xbf16> to vector<8x4xbf16>
    %32 = vector.shape_cast %29 : vector<8x4xbf16> to vector<1x1x8x4xbf16>
    tpu.vector_store %arg6[%c0_14, %c0_15, %c0_16, %c0_17], %32 {strides = array<i32>} : memref<1x8x8x4xbf16, #tpu.memory_space<vmem>>, vector<1x1x8x4xbf16>,
    %33 = vector.extract_strided_slice %26 {offsets = [0, 32], sizes = [8, 4], strides = [1, 1]} : vector<8x96xf32> to vector<8x4xf32>
    %34 = arith.truncf %33 : vector<8x4xf32> to vector<8x4xbf16>
    %c0_18 = arith.constant 0 : index
    %c0_19 = arith.constant 0 : index
    %c0_20 = arith.constant 0 : index
    %c0_21 = arith.constant 0 : index
    %35 = vector.load %arg7[%c0_18, %c0_19, %c0_20, %c0_21] : memref<1x8x8x4xbf16, #tpu.memory_space<vmem>>, vector<1x1x8x4xbf16>
    %36 = vector.shape_cast %35 : vector<1x1x8x4xbf16> to vector<8x4xbf16>
    %37 = vector.shape_cast %34 : vector<8x4xbf16> to vector<1x1x8x4xbf16>
    tpu.vector_store %arg7[%c0_18, %c0_19, %c0_20, %c0_21], %37 {strides = array<i32>} : memref<1x8x8x4xbf16, #tpu.memory_space<vmem>>, vector<1x1x8x4xbf16>,
    %38 = vector.extract_strided_slice %26 {offsets = [0, 64], sizes = [8, 4], strides = [1, 1]} : vector<8x96xf32> to vector<8x4xf32>
    %39 = arith.truncf %38 : vector<8x4xf32> to vector<8x4xbf16>
    %c0_22 = arith.constant 0 : index
    %c0_23 = arith.constant 0 : index
    %c0_24 = arith.constant 0 : index
    %c0_25 = arith.constant 0 : index
    %40 = vector.load %arg8[%c0_22, %c0_23, %c0_24, %c0_25] : memref<1x8x8x5xbf16, #tpu.memory_space<vmem>>, vector<1x1x8x4xbf16>
    %41 = vector.shape_cast %40 : vector<1x1x8x4xbf16> to vector<8x4xbf16>
    %42 = vector.shape_cast %39 : vector<8x4xbf16> to vector<1x1x8x4xbf16>
    tpu.vector_store %arg8[%c0_22, %c0_23, %c0_24, %c0_25], %42 {strides = array<i32>} : memref<1x8x8x5xbf16, #tpu.memory_space<vmem>>, vector<1x1x8x4xbf16>,
    %c0_26 = arith.constant 0 : index
    %c0_27 = arith.constant 0 : index
    %c0_28 = arith.constant 0 : index
    %c4 = arith.constant 4 : index
    %43 = vector.load %arg8[%c0_26, %c0_27, %c0_28, %c4] : memref<1x8x8x5xbf16, #tpu.memory_space<vmem>>, vector<1x1x8x1xbf16>
    %44 = vector.shape_cast %43 : vector<1x1x8x1xbf16> to vector<8x1xbf16>
    %45 = vector.shape_cast %27 : vector<8x1xbf16> to vector<1x1x8x1xbf16>
    tpu.vector_store %arg8[%c0_26, %c0_27, %c0_28, %c4], %45 {strides = array<i32>} : memref<1x8x8x5xbf16, #tpu.memory_space<vmem>>, vector<1x1x8x1xbf16>,
    %46 = vector.extract_strided_slice %26 {offsets = [0, 4], sizes = [8, 4], strides = [1, 1]} : vector<8x96xf32> to vector<8x4xf32>
    %47 = arith.truncf %46 : vector<8x4xf32> to vector<8x4xbf16>
    %c0_29 = arith.constant 0 : index
    %c1 = arith.constant 1 : index
    %c0_30 = arith.constant 0 : index
    %c0_31 = arith.constant 0 : index
    %48 = vector.load %arg6[%c0_29, %c1, %c0_30, %c0_31] : memref<1x8x8x4xbf16, #tpu.memory_space<vmem>>, vector<1x1x8x4xbf16>
    %49 = vector.shape_cast %48 : vector<1x1x8x4xbf16> to vector<8x4xbf16>
    %50 = vector.shape_cast %47 : vector<8x4xbf16> to vector<1x1x8x4xbf16>
    tpu.vector_store %arg6[%c0_29, %c1, %c0_30, %c0_31], %50 {strides = array<i32>} : memref<1x8x8x4xbf16, #tpu.memory_space<vmem>>, vector<1x1x8x4xbf16>,
    %51 = vector.extract_strided_slice %26 {offsets = [0, 36], sizes = [8, 4], strides = [1, 1]} : vector<8x96xf32> to vector<8x4xf32>
    %52 = arith.truncf %51 : vector<8x4xf32> to vector<8x4xbf16>
    %c0_32 = arith.constant 0 : index
    %c1_33 = arith.constant 1 : index
    %c0_34 = arith.constant 0 : index
    %c0_35 = arith.constant 0 : index
    %53 = vector.load %arg7[%c0_32, %c1_33, %c0_34, %c0_35] : memref<1x8x8x4xbf16, #tpu.memory_space<vmem>>, vector<1x1x8x4xbf16>
    %54 = vector.shape_cast %53 : vector<1x1x8x4xbf16> to vector<8x4xbf16>
    %55 = vector.shape_cast %52 : vector<8x4xbf16> to vector<1x1x8x4xbf16>
    tpu.vector_store %arg7[%c0_32, %c1_33, %c0_34, %c0_35], %55 {strides = array<i32>} : memref<1x8x8x4xbf16, #tpu.memory_space<vmem>>, vector<1x1x8x4xbf16>,
    %56 = vector.extract_strided_slice %26 {offsets = [0, 68], sizes = [8, 4], strides = [1, 1]} : vector<8x96xf32> to vector<8x4xf32>
    %57 = arith.truncf %56 : vector<8x4xf32> to vector<8x4xbf16>
    %c0_36 = arith.constant 0 : index
    %c1_37 = arith.constant 1 : index
    %c0_38 = arith.constant 0 : index
    %c0_39 = arith.constant 0 : index
    %58 = vector.load %arg8[%c0_36, %c1_37, %c0_38, %c0_39] : memref<1x8x8x5xbf16, #tpu.memory_space<vmem>>, vector<1x1x8x4xbf16>
    %59 = vector.shape_cast %58 : vector<1x1x8x4xbf16> to vector<8x4xbf16>
    %60 = vector.shape_cast %57 : vector<8x4xbf16> to vector<1x1x8x4xbf16>
    tpu.vector_store %arg8[%c0_36, %c1_37, %c0_38, %c0_39], %60 {strides = array<i32>} : memref<1x8x8x5xbf16, #tpu.memory_space<vmem>>, vector<1x1x8x4xbf16>,
    %c0_40 = arith.constant 0 : index
    %c1_41 = arith.constant 1 : index
    %c0_42 = arith.constant 0 : index
    %c4_43 = arith.constant 4 : index
    %61 = vector.load %arg8[%c0_40, %c1_41, %c0_42, %c4_43] : memref<1x8x8x5xbf16, #tpu.memory_space<vmem>>, vector<1x1x8x1xbf16>
    %62 = vector.shape_cast %61 : vector<1x1x8x1xbf16> to vector<8x1xbf16>
    %63 = vector.shape_cast %27 : vector<8x1xbf16> to vector<1x1x8x1xbf16>
    tpu.vector_store %arg8[%c0_40, %c1_41, %c0_42, %c4_43], %63 {strides = array<i32>} : memref<1x8x8x5xbf16, #tpu.memory_space<vmem>>, vector<1x1x8x1xbf16>,
    %64 = vector.extract_strided_slice %26 {offsets = [0, 8], sizes = [8, 4], strides = [1, 1]} : vector<8x96xf32> to vector<8x4xf32>
    %65 = arith.truncf %64 : vector<8x4xf32> to vector<8x4xbf16>
    %c0_44 = arith.constant 0 : index
    %c2 = arith.constant 2 : index
    %c0_45 = arith.constant 0 : index
    %c0_46 = arith.constant 0 : index
    %66 = vector.load %arg6[%c0_44, %c2, %c0_45, %c0_46] : memref<1x8x8x4xbf16, #tpu.memory_space<vmem>>, vector<1x1x8x4xbf16>
    %67 = vector.shape_cast %66 : vector<1x1x8x4xbf16> to vector<8x4xbf16>
    %68 = vector.shape_cast %65 : vector<8x4xbf16> to vector<1x1x8x4xbf16>
    tpu.vector_store %arg6[%c0_44, %c2, %c0_45, %c0_46], %68 {strides = array<i32>} : memref<1x8x8x4xbf16, #tpu.memory_space<vmem>>, vector<1x1x8x4xbf16>,
    %69 = vector.extract_strided_slice %26 {offsets = [0, 40], sizes = [8, 4], strides = [1, 1]} : vector<8x96xf32> to vector<8x4xf32>
    %70 = arith.truncf %69 : vector<8x4xf32> to vector<8x4xbf16>
    %c0_47 = arith.constant 0 : index
    %c2_48 = arith.constant 2 : index
    %c0_49 = arith.constant 0 : index
    %c0_50 = arith.constant 0 : index
    %71 = vector.load %arg7[%c0_47, %c2_48, %c0_49, %c0_50] : memref<1x8x8x4xbf16, #tpu.memory_space<vmem>>, vector<1x1x8x4xbf16>
    %72 = vector.shape_cast %71 : vector<1x1x8x4xbf16> to vector<8x4xbf16>
    %73 = vector.shape_cast %70 : vector<8x4xbf16> to vector<1x1x8x4xbf16>
    tpu.vector_store %arg7[%c0_47, %c2_48, %c0_49, %c0_50], %73 {strides = array<i32>} : memref<1x8x8x4xbf16, #tpu.memory_space<vmem>>, vector<1x1x8x4xbf16>,
    %74 = vector.extract_strided_slice %26 {offsets = [0, 72], sizes = [8, 4], strides = [1, 1]} : vector<8x96xf32> to vector<8x4xf32>
    %75 = arith.truncf %74 : vector<8x4xf32> to vector<8x4xbf16>
    %c0_51 = arith.constant 0 : index
    %c2_52 = arith.constant 2 : index
    %c0_53 = arith.constant 0 : index
    %c0_54 = arith.constant 0 : index
    %76 = vector.load %arg8[%c0_51, %c2_52, %c0_53, %c0_54] : memref<1x8x8x5xbf16, #tpu.memory_space<vmem>>, vector<1x1x8x4xbf16>
    %77 = vector.shape_cast %76 : vector<1x1x8x4xbf16> to vector<8x4xbf16>
    %78 = vector.shape_cast %75 : vector<8x4xbf16> to vector<1x1x8x4xbf16>
    tpu.vector_store %arg8[%c0_51, %c2_52, %c0_53, %c0_54], %78 {strides = array<i32>} : memref<1x8x8x5xbf16, #tpu.memory_space<vmem>>, vector<1x1x8x4xbf16>,
    %c0_55 = arith.constant 0 : index
    %c2_56 = arith.constant 2 : index
    %c0_57 = arith.constant 0 : index
    %c4_58 = arith.constant 4 : index
    %79 = vector.load %arg8[%c0_55, %c2_56, %c0_57, %c4_58] : memref<1x8x8x5xbf16, #tpu.memory_space<vmem>>, vector<1x1x8x1xbf16>
    %80 = vector.shape_cast %79 : vector<1x1x8x1xbf16> to vector<8x1xbf16>
    %81 = vector.shape_cast %27 : vector<8x1xbf16> to vector<1x1x8x1xbf16>
    tpu.vector_store %arg8[%c0_55, %c2_56, %c0_57, %c4_58], %81 {strides = array<i32>} : memref<1x8x8x5xbf16, #tpu.memory_space<vmem>>, vector<1x1x8x1xbf16>,
    %82 = vector.extract_strided_slice %26 {offsets = [0, 12], sizes = [8, 4], strides = [1, 1]} : vector<8x96xf32> to vector<8x4xf32>
    %83 = arith.truncf %82 : vector<8x4xf32> to vector<8x4xbf16>
    %c0_59 = arith.constant 0 : index
    %c3 = arith.constant 3 : index
    %c0_60 = arith.constant 0 : index
    %c0_61 = arith.constant 0 : index
    %84 = vector.load %arg6[%c0_59, %c3, %c0_60, %c0_61] : memref<1x8x8x4xbf16, #tpu.memory_space<vmem>>, vector<1x1x8x4xbf16>
    %85 = vector.shape_cast %84 : vector<1x1x8x4xbf16> to vector<8x4xbf16>
    %86 = vector.shape_cast %83 : vector<8x4xbf16> to vector<1x1x8x4xbf16>
    tpu.vector_store %arg6[%c0_59, %c3, %c0_60, %c0_61], %86 {strides = array<i32>} : memref<1x8x8x4xbf16, #tpu.memory_space<vmem>>, vector<1x1x8x4xbf16>,
    %87 = vector.extract_strided_slice %26 {offsets = [0, 44], sizes = [8, 4], strides = [1, 1]} : vector<8x96xf32> to vector<8x4xf32>
    %88 = arith.truncf %87 : vector<8x4xf32> to vector<8x4xbf16>
    %c0_62 = arith.constant 0 : index
    %c3_63 = arith.constant 3 : index
    %c0_64 = arith.constant 0 : index
    %c0_65 = arith.constant 0 : index
    %89 = vector.load %arg7[%c0_62, %c3_63, %c0_64, %c0_65] : memref<1x8x8x4xbf16, #tpu.memory_space<vmem>>, vector<1x1x8x4xbf16>
    %90 = vector.shape_cast %89 : vector<1x1x8x4xbf16> to vector<8x4xbf16>
    %91 = vector.shape_cast %88 : vector<8x4xbf16> to vector<1x1x8x4xbf16>
    tpu.vector_store %arg7[%c0_62, %c3_63, %c0_64, %c0_65], %91 {strides = array<i32>} : memref<1x8x8x4xbf16, #tpu.memory_space<vmem>>, vector<1x1x8x4xbf16>,
    %92 = vector.extract_strided_slice %26 {offsets = [0, 76], sizes = [8, 4], strides = [1, 1]} : vector<8x96xf32> to vector<8x4xf32>
    %93 = arith.truncf %92 : vector<8x4xf32> to vector<8x4xbf16>
    %c0_66 = arith.constant 0 : index
    %c3_67 = arith.constant 3 : index
    %c0_68 = arith.constant 0 : index
    %c0_69 = arith.constant 0 : index
    %94 = vector.load %arg8[%c0_66, %c3_67, %c0_68, %c0_69] : memref<1x8x8x5xbf16, #tpu.memory_space<vmem>>, vector<1x1x8x4xbf16>
    %95 = vector.shape_cast %94 : vector<1x1x8x4xbf16> to vector<8x4xbf16>
    %96 = vector.shape_cast %93 : vector<8x4xbf16> to vector<1x1x8x4xbf16>
    tpu.vector_store %arg8[%c0_66, %c3_67, %c0_68, %c0_69], %96 {strides = array<i32>} : memref<1x8x8x5xbf16, #tpu.memory_space<vmem>>, vector<1x1x8x4xbf16>,
    %c0_70 = arith.constant 0 : index
    %c3_71 = arith.constant 3 : index
    %c0_72 = arith.constant 0 : index
    %c4_73 = arith.constant 4 : index
    %97 = vector.load %arg8[%c0_70, %c3_71, %c0_72, %c4_73] : memref<1x8x8x5xbf16, #tpu.memory_space<vmem>>, vector<1x1x8x1xbf16>
    %98 = vector.shape_cast %97 : vector<1x1x8x1xbf16> to vector<8x1xbf16>
    %99 = vector.shape_cast %27 : vector<8x1xbf16> to vector<1x1x8x1xbf16>
    tpu.vector_store %arg8[%c0_70, %c3_71, %c0_72, %c4_73], %99 {strides = array<i32>} : memref<1x8x8x5xbf16, #tpu.memory_space<vmem>>, vector<1x1x8x1xbf16>,
    %100 = vector.extract_strided_slice %26 {offsets = [0, 16], sizes = [8, 4], strides = [1, 1]} : vector<8x96xf32> to vector<8x4xf32>
    %101 = arith.truncf %100 : vector<8x4xf32> to vector<8x4xbf16>
    %c0_74 = arith.constant 0 : index
    %c4_75 = arith.constant 4 : index
    %c0_76 = arith.constant 0 : index
    %c0_77 = arith.constant 0 : index
    %102 = vector.load %arg6[%c0_74, %c4_75, %c0_76, %c0_77] : memref<1x8x8x4xbf16, #tpu.memory_space<vmem>>, vector<1x1x8x4xbf16>
    %103 = vector.shape_cast %102 : vector<1x1x8x4xbf16> to vector<8x4xbf16>
    %104 = vector.shape_cast %101 : vector<8x4xbf16> to vector<1x1x8x4xbf16>
    tpu.vector_store %arg6[%c0_74, %c4_75, %c0_76, %c0_77], %104 {strides = array<i32>} : memref<1x8x8x4xbf16, #tpu.memory_space<vmem>>, vector<1x1x8x4xbf16>,
    %105 = vector.extract_strided_slice %26 {offsets = [0, 48], sizes = [8, 4], strides = [1, 1]} : vector<8x96xf32> to vector<8x4xf32>
    %106 = arith.truncf %105 : vector<8x4xf32> to vector<8x4xbf16>
    %c0_78 = arith.constant 0 : index
    %c4_79 = arith.constant 4 : index
    %c0_80 = arith.constant 0 : index
    %c0_81 = arith.constant 0 : index
    %107 = vector.load %arg7[%c0_78, %c4_79, %c0_80, %c0_81] : memref<1x8x8x4xbf16, #tpu.memory_space<vmem>>, vector<1x1x8x4xbf16>
    %108 = vector.shape_cast %107 : vector<1x1x8x4xbf16> to vector<8x4xbf16>
    %109 = vector.shape_cast %106 : vector<8x4xbf16> to vector<1x1x8x4xbf16>
    tpu.vector_store %arg7[%c0_78, %c4_79, %c0_80, %c0_81], %109 {strides = array<i32>} : memref<1x8x8x4xbf16, #tpu.memory_space<vmem>>, vector<1x1x8x4xbf16>,
    %110 = vector.extract_strided_slice %26 {offsets = [0, 80], sizes = [8, 4], strides = [1, 1]} : vector<8x96xf32> to vector<8x4xf32>
    %111 = arith.truncf %110 : vector<8x4xf32> to vector<8x4xbf16>
    %c0_82 = arith.constant 0 : index
    %c4_83 = arith.constant 4 : index
    %c0_84 = arith.constant 0 : index
    %c0_85 = arith.constant 0 : index
    %112 = vector.load %arg8[%c0_82, %c4_83, %c0_84, %c0_85] : memref<1x8x8x5xbf16, #tpu.memory_space<vmem>>, vector<1x1x8x4xbf16>
    %113 = vector.shape_cast %112 : vector<1x1x8x4xbf16> to vector<8x4xbf16>
    %114 = vector.shape_cast %111 : vector<8x4xbf16> to vector<1x1x8x4xbf16>
    tpu.vector_store %arg8[%c0_82, %c4_83, %c0_84, %c0_85], %114 {strides = array<i32>} : memref<1x8x8x5xbf16, #tpu.memory_space<vmem>>, vector<1x1x8x4xbf16>,
    %c0_86 = arith.constant 0 : index
    %c4_87 = arith.constant 4 : index
    %c0_88 = arith.constant 0 : index
    %c4_89 = arith.constant 4 : index
    %115 = vector.load %arg8[%c0_86, %c4_87, %c0_88, %c4_89] : memref<1x8x8x5xbf16, #tpu.memory_space<vmem>>, vector<1x1x8x1xbf16>
    %116 = vector.shape_cast %115 : vector<1x1x8x1xbf16> to vector<8x1xbf16>
    %117 = vector.shape_cast %27 : vector<8x1xbf16> to vector<1x1x8x1xbf16>
    tpu.vector_store %arg8[%c0_86, %c4_87, %c0_88, %c4_89], %117 {strides = array<i32>} : memref<1x8x8x5xbf16, #tpu.memory_space<vmem>>, vector<1x1x8x1xbf16>,
    %118 = vector.extract_strided_slice %26 {offsets = [0, 20], sizes = [8, 4], strides = [1, 1]} : vector<8x96xf32> to vector<8x4xf32>
    %119 = arith.truncf %118 : vector<8x4xf32> to vector<8x4xbf16>
    %c0_90 = arith.constant 0 : index
    %c5 = arith.constant 5 : index
    %c0_91 = arith.constant 0 : index
    %c0_92 = arith.constant 0 : index
    %120 = vector.load %arg6[%c0_90, %c5, %c0_91, %c0_92] : memref<1x8x8x4xbf16, #tpu.memory_space<vmem>>, vector<1x1x8x4xbf16>
    %121 = vector.shape_cast %120 : vector<1x1x8x4xbf16> to vector<8x4xbf16>
    %122 = vector.shape_cast %119 : vector<8x4xbf16> to vector<1x1x8x4xbf16>
    tpu.vector_store %arg6[%c0_90, %c5, %c0_91, %c0_92], %122 {strides = array<i32>} : memref<1x8x8x4xbf16, #tpu.memory_space<vmem>>, vector<1x1x8x4xbf16>,
    %123 = vector.extract_strided_slice %26 {offsets = [0, 52], sizes = [8, 4], strides = [1, 1]} : vector<8x96xf32> to vector<8x4xf32>
    %124 = arith.truncf %123 : vector<8x4xf32> to vector<8x4xbf16>
    %c0_93 = arith.constant 0 : index
    %c5_94 = arith.constant 5 : index
    %c0_95 = arith.constant 0 : index
    %c0_96 = arith.constant 0 : index
    %125 = vector.load %arg7[%c0_93, %c5_94, %c0_95, %c0_96] : memref<1x8x8x4xbf16, #tpu.memory_space<vmem>>, vector<1x1x8x4xbf16>
    %126 = vector.shape_cast %125 : vector<1x1x8x4xbf16> to vector<8x4xbf16>
    %127 = vector.shape_cast %124 : vector<8x4xbf16> to vector<1x1x8x4xbf16>
    tpu.vector_store %arg7[%c0_93, %c5_94, %c0_95, %c0_96], %127 {strides = array<i32>} : memref<1x8x8x4xbf16, #tpu.memory_space<vmem>>, vector<1x1x8x4xbf16>,
    %128 = vector.extract_strided_slice %26 {offsets = [0, 84], sizes = [8, 4], strides = [1, 1]} : vector<8x96xf32> to vector<8x4xf32>
    %129 = arith.truncf %128 : vector<8x4xf32> to vector<8x4xbf16>
    %c0_97 = arith.constant 0 : index
    %c5_98 = arith.constant 5 : index
    %c0_99 = arith.constant 0 : index
    %c0_100 = arith.constant 0 : index
    %130 = vector.load %arg8[%c0_97, %c5_98, %c0_99, %c0_100] : memref<1x8x8x5xbf16, #tpu.memory_space<vmem>>, vector<1x1x8x4xbf16>
    %131 = vector.shape_cast %130 : vector<1x1x8x4xbf16> to vector<8x4xbf16>
    %132 = vector.shape_cast %129 : vector<8x4xbf16> to vector<1x1x8x4xbf16>
    tpu.vector_store %arg8[%c0_97, %c5_98, %c0_99, %c0_100], %132 {strides = array<i32>} : memref<1x8x8x5xbf16, #tpu.memory_space<vmem>>, vector<1x1x8x4xbf16>,
    %c0_101 = arith.constant 0 : index
    %c5_102 = arith.constant 5 : index
    %c0_103 = arith.constant 0 : index
    %c4_104 = arith.constant 4 : index
    %133 = vector.load %arg8[%c0_101, %c5_102, %c0_103, %c4_104] : memref<1x8x8x5xbf16, #tpu.memory_space<vmem>>, vector<1x1x8x1xbf16>
    %134 = vector.shape_cast %133 : vector<1x1x8x1xbf16> to vector<8x1xbf16>
    %135 = vector.shape_cast %27 : vector<8x1xbf16> to vector<1x1x8x1xbf16>
    tpu.vector_store %arg8[%c0_101, %c5_102, %c0_103, %c4_104], %135 {strides = array<i32>} : memref<1x8x8x5xbf16, #tpu.memory_space<vmem>>, vector<1x1x8x1xbf16>,
    %136 = vector.extract_strided_slice %26 {offsets = [0, 24], sizes = [8, 4], strides = [1, 1]} : vector<8x96xf32> to vector<8x4xf32>
    %137 = arith.truncf %136 : vector<8x4xf32> to vector<8x4xbf16>
    %c0_105 = arith.constant 0 : index
    %c6 = arith.constant 6 : index
    %c0_106 = arith.constant 0 : index
    %c0_107 = arith.constant 0 : index
    %138 = vector.load %arg6[%c0_105, %c6, %c0_106, %c0_107] : memref<1x8x8x4xbf16, #tpu.memory_space<vmem>>, vector<1x1x8x4xbf16>
    %139 = vector.shape_cast %138 : vector<1x1x8x4xbf16> to vector<8x4xbf16>
    %140 = vector.shape_cast %137 : vector<8x4xbf16> to vector<1x1x8x4xbf16>
    tpu.vector_store %arg6[%c0_105, %c6, %c0_106, %c0_107], %140 {strides = array<i32>} : memref<1x8x8x4xbf16, #tpu.memory_space<vmem>>, vector<1x1x8x4xbf16>,
    %141 = vector.extract_strided_slice %26 {offsets = [0, 56], sizes = [8, 4], strides = [1, 1]} : vector<8x96xf32> to vector<8x4xf32>
    %142 = arith.truncf %141 : vector<8x4xf32> to vector<8x4xbf16>
    %c0_108 = arith.constant 0 : index
    %c6_109 = arith.constant 6 : index
    %c0_110 = arith.constant 0 : index
    %c0_111 = arith.constant 0 : index
    %143 = vector.load %arg7[%c0_108, %c6_109, %c0_110, %c0_111] : memref<1x8x8x4xbf16, #tpu.memory_space<vmem>>, vector<1x1x8x4xbf16>
    %144 = vector.shape_cast %143 : vector<1x1x8x4xbf16> to vector<8x4xbf16>
    %145 = vector.shape_cast %142 : vector<8x4xbf16> to vector<1x1x8x4xbf16>
    tpu.vector_store %arg7[%c0_108, %c6_109, %c0_110, %c0_111], %145 {strides = array<i32>} : memref<1x8x8x4xbf16, #tpu.memory_space<vmem>>, vector<1x1x8x4xbf16>,
    %146 = vector.extract_strided_slice %26 {offsets = [0, 88], sizes = [8, 4], strides = [1, 1]} : vector<8x96xf32> to vector<8x4xf32>
    %147 = arith.truncf %146 : vector<8x4xf32> to vector<8x4xbf16>
    %c0_112 = arith.constant 0 : index
    %c6_113 = arith.constant 6 : index
    %c0_114 = arith.constant 0 : index
    %c0_115 = arith.constant 0 : index
    %148 = vector.load %arg8[%c0_112, %c6_113, %c0_114, %c0_115] : memref<1x8x8x5xbf16, #tpu.memory_space<vmem>>, vector<1x1x8x4xbf16>
    %149 = vector.shape_cast %148 : vector<1x1x8x4xbf16> to vector<8x4xbf16>
    %150 = vector.shape_cast %147 : vector<8x4xbf16> to vector<1x1x8x4xbf16>
    tpu.vector_store %arg8[%c0_112, %c6_113, %c0_114, %c0_115], %150 {strides = array<i32>} : memref<1x8x8x5xbf16, #tpu.memory_space<vmem>>, vector<1x1x8x4xbf16>,
    %c0_116 = arith.constant 0 : index
    %c6_117 = arith.constant 6 : index
    %c0_118 = arith.constant 0 : index
    %c4_119 = arith.constant 4 : index
    %151 = vector.load %arg8[%c0_116, %c6_117, %c0_118, %c4_119] : memref<1x8x8x5xbf16, #tpu.memory_space<vmem>>, vector<1x1x8x1xbf16>
    %152 = vector.shape_cast %151 : vector<1x1x8x1xbf16> to vector<8x1xbf16>
    %153 = vector.shape_cast %27 : vector<8x1xbf16> to vector<1x1x8x1xbf16>
    tpu.vector_store %arg8[%c0_116, %c6_117, %c0_118, %c4_119], %153 {strides = array<i32>} : memref<1x8x8x5xbf16, #tpu.memory_space<vmem>>, vector<1x1x8x1xbf16>,
    %154 = vector.extract_strided_slice %26 {offsets = [0, 28], sizes = [8, 4], strides = [1, 1]} : vector<8x96xf32> to vector<8x4xf32>
    %155 = arith.truncf %154 : vector<8x4xf32> to vector<8x4xbf16>
    %c0_120 = arith.constant 0 : index
    %c7 = arith.constant 7 : index
    %c0_121 = arith.constant 0 : index
    %c0_122 = arith.constant 0 : index
    %156 = vector.load %arg6[%c0_120, %c7, %c0_121, %c0_122] : memref<1x8x8x4xbf16, #tpu.memory_space<vmem>>, vector<1x1x8x4xbf16>
    %157 = vector.shape_cast %156 : vector<1x1x8x4xbf16> to vector<8x4xbf16>
    %158 = vector.shape_cast %155 : vector<8x4xbf16> to vector<1x1x8x4xbf16>
    tpu.vector_store %arg6[%c0_120, %c7, %c0_121, %c0_122], %158 {strides = array<i32>} : memref<1x8x8x4xbf16, #tpu.memory_space<vmem>>, vector<1x1x8x4xbf16>,
    %159 = vector.extract_strided_slice %26 {offsets = [0, 60], sizes = [8, 4], strides = [1, 1]} : vector<8x96xf32> to vector<8x4xf32>
    %160 = arith.truncf %159 : vector<8x4xf32> to vector<8x4xbf16>
    %c0_123 = arith.constant 0 : index
    %c7_124 = arith.constant 7 : index
    %c0_125 = arith.constant 0 : index
    %c0_126 = arith.constant 0 : index
    %161 = vector.load %arg7[%c0_123, %c7_124, %c0_125, %c0_126] : memref<1x8x8x4xbf16, #tpu.memory_space<vmem>>, vector<1x1x8x4xbf16>
    %162 = vector.shape_cast %161 : vector<1x1x8x4xbf16> to vector<8x4xbf16>
    %163 = vector.shape_cast %160 : vector<8x4xbf16> to vector<1x1x8x4xbf16>
    tpu.vector_store %arg7[%c0_123, %c7_124, %c0_125, %c0_126], %163 {strides = array<i32>} : memref<1x8x8x4xbf16, #tpu.memory_space<vmem>>, vector<1x1x8x4xbf16>,
    %164 = vector.extract_strided_slice %26 {offsets = [0, 92], sizes = [8, 4], strides = [1, 1]} : vector<8x96xf32> to vector<8x4xf32>
    %165 = arith.truncf %164 : vector<8x4xf32> to vector<8x4xbf16>
    %c0_127 = arith.constant 0 : index
    %c7_128 = arith.constant 7 : index
    %c0_129 = arith.constant 0 : index
    %c0_130 = arith.constant 0 : index
    %166 = vector.load %arg8[%c0_127, %c7_128, %c0_129, %c0_130] : memref<1x8x8x5xbf16, #tpu.memory_space<vmem>>, vector<1x1x8x4xbf16>
    %167 = vector.shape_cast %166 : vector<1x1x8x4xbf16> to vector<8x4xbf16>
    %168 = vector.shape_cast %165 : vector<8x4xbf16> to vector<1x1x8x4xbf16>
    tpu.vector_store %arg8[%c0_127, %c7_128, %c0_129, %c0_130], %168 {strides = array<i32>} : memref<1x8x8x5xbf16, #tpu.memory_space<vmem>>, vector<1x1x8x4xbf16>,
    %c0_131 = arith.constant 0 : index
    %c7_132 = arith.constant 7 : index
    %c0_133 = arith.constant 0 : index
    %c4_134 = arith.constant 4 : index
    %169 = vector.load %arg8[%c0_131, %c7_132, %c0_133, %c4_134] : memref<1x8x8x5xbf16, #tpu.memory_space<vmem>>, vector<1x1x8x1xbf16>
    %170 = vector.shape_cast %169 : vector<1x1x8x1xbf16> to vector<8x1xbf16>
    %171 = vector.shape_cast %27 : vector<8x1xbf16> to vector<1x1x8x1xbf16>
    tpu.vector_store %arg8[%c0_131, %c7_132, %c0_133, %c4_134], %171 {strides = array<i32>} : memref<1x8x8x5xbf16, #tpu.memory_space<vmem>>, vector<1x1x8x1xbf16>,
    return
  }
  func.func @transform_0(%arg0: i32, %arg1: i32) -> (i32, i32, i32) {
    %c0_i32 = arith.constant 0 : i32
    %c0_i32_0 = arith.constant 0 : i32
    return %arg0, %arg1, %c0_i32 : i32, i32, i32
  }
  func.func @transform_1(%arg0: i32, %arg1: i32) -> (i32, i32) {
    %c0_i32 = arith.constant 0 : i32
    %c0_i32_0 = arith.constant 0 : i32
    %c0_i32_1 = arith.constant 0 : i32
    return %c0_i32, %c0_i32_0 : i32, i32
  }
  func.func @transform_2(%arg0: i32, %arg1: i32) -> (i32, i32) {
    %c0_i32 = arith.constant 0 : i32
    %c0_i32_0 = arith.constant 0 : i32
    %c0_i32_1 = arith.constant 0 : i32
    return %c0_i32, %c0_i32_0 : i32, i32
  }
  func.func @transform_3(%arg0: i32, %arg1: i32) -> (i32, i32) {
    %c0_i32 = arith.constant 0 : i32
    %c0_i32_0 = arith.constant 0 : i32
    %c0_i32_1 = arith.constant 0 : i32
    return %c0_i32, %c0_i32_0 : i32, i32
  }
  func.func @transform_4(%arg0: i32, %arg1: i32) -> (i32, i32, i32, i32) {
    %c0_i32 = arith.constant 0 : i32
    %c0_i32_0 = arith.constant 0 : i32
    %c0_i32_1 = arith.constant 0 : i32
    return %arg0, %c0_i32, %arg1, %c0_i32_0 : i32, i32, i32, i32
  }
  func.func @transform_5(%arg0: i32, %arg1: i32) -> (i32, i32, i32, i32) {
    %c0_i32 = arith.constant 0 : i32
    %c0_i32_0 = arith.constant 0 : i32
    %c0_i32_1 = arith.constant 0 : i32
    return %arg0, %c0_i32, %arg1, %c0_i32_0 : i32, i32, i32, i32
  }
  func.func @transform_6(%arg0: i32, %arg1: i32) -> (i32, i32, i32, i32) {
    %c0_i32 = arith.constant 0 : i32
    %c0_i32_0 = arith.constant 0 : i32
    %c0_i32_1 = arith.constant 0 : i32
    return %arg0, %c0_i32, %arg1, %c0_i32_0 : i32, i32, i32, i32
  }
}

</mosaic_0001>

<bundles_post_ra>
// kernel: tpu_custom_call.1
= control target key start
LH: loop header
LB: loop body
LE: loop exit
PB: predicated region body
PF: predicated region fallthrough
CT: control target
= control target key end

     0   :  { %12 = vsyncpa [#allocation3], 0  ;;  %s1355_s0 = inlined_call_operand.hbm [shape: f32[2,8,32], index: 0, kind: input, shape index: {}]   ;;  %s1356_s1 = inlined_call_operand.hbm [shape: f32[1,32], index: 1, kind: input, shape index: {}]   ;;  %s1357_s2 = inlined_call_operand.vmem [shape: f32[1,32], index: 2, kind: input, shape index: {}]   ;;  %s1358_s3 = inlined_call_operand.hbm [shape: bf16[32,96], index: 3, kind: input, shape index: {}]   ;;  %s1359_s4 = inlined_call_operand.vmem [shape: bf16[2,8,8,4], index: 4, kind: output, shape index: {0}]   ;;  %s1360_s5 = inlined_call_operand.vmem [shape: bf16[2,8,8,4], index: 5, kind: output, shape index: {1}]   ;;  %s1361_s6 = inlined_call_operand.vmem [shape: bf16[2,8,8,5], index: 6, kind: output, shape index: {2}]  }
   0x1   :  { %14 = vsyncpa [#allocation3 + $0x1], 0 }
   0x2   :  { %15 = vsyncpa [#allocation5], 0  ;;  %s1152_s21 = smov 0   ;;  %s1154_s22 = smov 0  }
   0x3   :  { %s1156_s23 = smov 0   ;;  %s1158_s24 = smov 0  }
   0x4   :  { %s1160_s25 = smov 0   ;;  %s1162_s26 = smov 0  }
   0x5 LB: > { %s771_s27 = sadd.s32 4294967295, %s1086_s26   ;;  %p55_p0 = scmp.ne.s32.totalorder %s1070_s22, %s1066_s21  ;;  %s1086_s26 = sphi %s1162_s26, %s21_s26   ;;  %s1082_s25 = sphi %s1160_s25, %s1370_s25   ;;  %s1078_s24 = sphi %s1158_s24, %s1369_s24   ;;  %s1074_s23 = sphi %s1156_s23, %s1368_s23   ;;  %s1070_s22 = sphi %s1154_s22, %s1367_s22   ;;  %s1066_s21 = sphi %s1152_s21, %s1366_s21  }
   0x6   : > { %p1182_p1 = scmp.eq.s32.totalorder %s771_s27, 0  ;;  %p773_p2 = scmp.ge.s32.totalorder %s1086_s26, 1 }
   0x7   : > { %p213_p3 = scmp.lt.s32.totalorder %s1086_s26, 3  ;;  %s225_s8 = sshll.u32 %s1356_s1, 4  ;;  %s226_s8 = int_to_ptr.hbm [resolvable:$true] %s225_s8 }
   0x8   : > { %p1190_p4 = por %p1182_p1, %p55_p0  ;;  %s1088_s10 = smov [#allocation4]  }
   0x9   : > { %p1197_p5 = pnand %p773_p2, %p213_p3  ;;  %s227_s11 = sshll.u32 %s1088_s10, 4  ;;  %s228_s11 = int_to_ptr.vmem [resolvable:$true] %s227_s11 }
   0xa   : > { %s239_s14 = sshll.u32 %s1358_s3, 4  ;;  %s1089_s15 = smov [#allocation6]   ;;  %s240_s14 = int_to_ptr.hbm [resolvable:$true] %s239_s14 }
   0xb   : > { %p843_p6 = pneg %p1197_p5  ;;  %s241_s16 = sshll.u32 %s1089_s15, 4  ;;  %s242_s16 = int_to_ptr.vmem [resolvable:$true] %s241_s16 }
   0xc   : > { %s1090_s17 = smov 64   ;;  %s1091_s18 = smov 4  }
   0xd   : > { %p844_p7 = pnand %p843_p6, %p1182_p1  ;;  %s33_s19 = sadd.s32 1, %s1082_s25 }
   0xe   : > { %s42_s20 = sadd.s32 1, %s1074_s23  ;;  %p35_p8 = scmp.ge.s32.totalorder %s33_s19, 2 }
   0xf   : > { %846 = dma.hbm_to_vmem [thread:$0]  (!%p844_p7), %s226_s8, 16, %s228_s11, [#allocation5]  }
  0x10   : > { %849 = dma.hbm_to_vmem [thread:$0]  (!%p844_p7), %s240_s14, 256, %s242_s16, [#allocation5], %s1090_s17, %s1090_s17, %s1091_s18  }
  0x11   : > { %p49_p9 = scmp.ne.s32.totalorder %s1074_s23, %s1070_s22  ;;  %p50_p10 = scmp.eq.s32.totalorder %s1086_s26, 0 }
  0x12   : > { %p856_p11 = scmp.lt.s32.totalorder %s1086_s26, 2  ;;  %s1372_s19 = smov (%p35_p8, %s33_s19), 0 }
  0x13   : > { %p1216_p12 = por %p50_p10, %p49_p9  ;;  %s255_s27 = sand.u32 1, %s1074_s23  }
  0x14   : > { %s37_s30 = ssub.s32 %s1082_s25, %s1372_s19  ;;  %s777_s7 = sshll.u32 %s255_s27, 3 }
  0x15   : > { %p40_p13 = scmp.eq.s32.totalorder %s37_s30, 0  ;;  %s778_s8 = sshll.u32 %s1082_s25, 3 }
  0x16   : > { %s264_s13 = scalar_lea.hbm %s1355_s0, %s778_s8  ;;  %s259_s14 = scalar_lea.vmem [#allocation2], %s777_s7 }
  0x17   : > { %s1225_s10 = scalar_select %p40_p13, %s1074_s23, %s42_s20  }
  0x18   : > { %s268_s15 = sshll.u32 %s259_s14, 4  ;;  %s266_s16 = sshll.u32 %s264_s13, 4  ;;  %s269_s15 = int_to_ptr.vmem [resolvable:$true] %s268_s15  ;;  %s267_s16 = int_to_ptr.hbm [resolvable:$true] %s266_s16 }
  0x19   : > { %p851_p0 = pnand %p856_p11, %p1216_p12  ;;  %s256_s17 = scalar_lea.sflag [#allocation3], %s255_s27 }
  0x1a   : > { %277 = sbr.rel (%p1197_p5) target bundleno = 614 (0x266), region = 36  ;;  %s279_s18 = sand.u32 (!%p1197_p5), 1, %s1070_s22  }
  0x1b   : > { %853 = dma.hbm_to_vmem [thread:$0]  (!%p851_p0), %s267_s16, 128, %s269_s15, %s256_s17  }
  0x1c   : > { %s780_s20 = sshll.u32 (!%p1197_p5), %s279_s18, 3  ;;  %s280_s30 = scalar_lea.sflag (!%p1197_p5), [#allocation3], %s279_s18 }
  0x1d   : > { %s283_s11 = scalar_lea.vmem (!%p1197_p5), [#allocation2], %s780_s20 }
  0x1f   : > { %1057 = dma.done.wait (%p1190_p4), %s280_s30, 128  }
  0x20   : > { %1059 = vsyncadd (%p1190_p4), %s280_s30, 4294967168 }
  0x21   : > { %1061 = dma.done.wait (%p1182_p1), [#allocation5], 272  }
  0x22   : > { %1063 = vsyncadd (%p1182_p1), [#allocation5], 4294967024  ;;  %vm369_vm0 = vcmask 261120   ;;  %v368_v0 = vld [vmem:[%s283_s11] sm:$0xff]  ;;  %v1092_v2 = vmov 32.0   ;;  %v831_v15 = vld [vmem:[#allocation6] sm:$0xff] }
  0x23   : > { %v370_v1 = vsel %vm369_vm0, %v368_v0, 0.0  ;;  %938 = vrcp.f32 %v1092_v2  ;;  %v832_v14 = vld [vmem:[#allocation6 + $0x8] sm:$0xff]  ;;  %v936_v25 = vld [vmem:[#allocation4] ss:$0 sm:$0xff]  ;;  %p342_p1 = scmp.lt.s32.totalorder %s1078_s24, 1  ;;  %vm443_vm5 = vcmask 27648  }
  0x24   : > { %371 = vadd.xlane.f32.xlu0 %v370_v1  ;;  %435 = vmatpush.bf16.msra.mxu0 %v832_v14  ;;  %v937_v28 = vld [vmem:[%s1357_s2] ss:$0 sm:$0xff]  ;;  %s1093_s8 = smov 60   ;;  %s1094_s12 = smov 124   ;;  %vm454_vm6 = vcmask 35872  }
  0x25   : > { %s1374_s24 = smov (!%p342_p1, %s1078_s24), 1  ;;  %s1095_s13 = smov 96   ;;  %v1116_v41 = vmov 1065369472  }
  0x26   : > { %s1253_s9 = sshll.u32 %s1374_s24, 5  ;;  %s1096_s24 = smov 48  }
  0x27   : > { %s1259_s7 = scalar_lea.vmem %s1359_s4, %s1253_s9  ;;  %s1097_s14 = smov 92  }
  0x28   : > { %436 = vmatpush.bf16.msra.mxu0 %v831_v15  ;;  %s1098_s15 = smov 64   ;;  %s1099_s16 = smov 36  }
  0x29   : > { %v939_v3 = vpop.eup %938  ;;  %s1100_s17 = smov 88   ;;  %s1101_s18 = smov 120  }
  0x2a   : > { %v374_v4 = vmul.f32 32.0, %v939_v3  ;;  %vm378_vm1 = vweird.f32 %v939_v3  ;;  %s1102_s20 = smov 108   ;;  %s1103_s30 = smov 116  }
  0x2b   : > { %s1104_s11 = smov 56   ;;  %s1105_s28 = smov 72  }
  0x2c   : > { %v375_v5 = vsub.f32 1.0, %v374_v4  ;;  %s1106_s29 = smov 52   ;;  %s1107_s21 = smov 84  }
  0x2d   : > { %s1108_s27 = smov 40  }
  0x2e   : > { %v376_v6 = vmul.f32 %v939_v3, %v375_v5 }
  0x30   : > { %v377_v7 = vadd.f32 %v939_v3, %v376_v6 }
  0x32   : > { %v379_v8 = vsel %vm378_vm1, %v939_v3, %v377_v7 }
  0x97   : > { %v372_v9 = vpop.xlane.xlu0 %371 }
  0x98   : > { %v380_v10 = vmul.f32 %v379_v8, %v372_v9 }
  0x9a   : > { %v381_v11 = vsub.f32 %v368_v0, %v380_v10 }
  0x9c   : > { %v382_v12 = vmul.f32 %v381_v11, %v381_v11 }
  0x9e   : > { %v383_v13 = vsel %vm369_vm0, %v382_v12, 0.0 }
  0x9f   : > { %384 = vadd.xlane.f32.xlu0 %v383_v13 }
 0x112   : > { %v385_v16 = vpop.xlane.xlu0 %384 }
 0x113   : > { %v386_v17 = vmul.f32 %v385_v16, %v379_v8 }
 0x115   : > { %v387_v18 = vadd.f32 1e-05, %v386_v17 }
 0x117   : > { %940 = vrsqrt.f32 %v387_v18  ;;  %vm394_vm3 = vweird.f32 %v387_v18 }
 0x11d   : > { %v941_v19 = vpop.eup %940 }
 0x11e   : > { %v389_v20 = vmul.f32 %v941_v19, %v387_v18  ;;  %vm395_vm2 = vweird.f32 %v941_v19 }
 0x11f   : > { %vm396_vm4 = vmor %vm394_vm3, %vm395_vm2 }
 0x120   : > { %v390_v21 = vmul.f32 %v941_v19, %v389_v20 }
 0x122   : > { %v391_v22 = vmul.f32 0.5, %v390_v21 }
 0x124   : > { %v392_v23 = vsub.f32 1.5, %v391_v22 }
 0x126   : > { %v393_v24 = vmul.f32 %v941_v19, %v392_v23 }
 0x128   : > { %v397_v26 = vsel %vm396_vm4, %v941_v19, %v393_v24 }
 0x129   : > { %v398_v27 = vmul.f32 %v397_v26, %v381_v11 }
 0x12b   : > { %v403_v29 = vmul.f32 %v936_v25, %v398_v27 }
 0x12d   : > { %v408_v30 = vadd.f32 %v937_v28, %v403_v29 }
 0x12f   : > { %v409_v31 = vpack.c.bf16 %v408_v30, %v408_v30 }
 0x131   : > { %797 = vmatmul.msk.bf16.vlgmr.msra.gmra.mxu0 %vm369_vm0, %v409_v31 }
 0x1ae   : > { %v438_v32 = vpop.f32.mrf.mxu0 }
 0x1af   : > { %v442_v33 = vpack.c.bf16 %v438_v32, %v438_v32 }
 0x1b1   : > { %466 = vrot.lane.b32.xlu0 %v442_v33, %s1093_s8  ;;  %456 = vrot.lane.b32.xlu2 %v442_v33, %s1094_s12  ;;  %444 = vst.msk [vmem:[%s1259_s7] sm:$0xf] %vm443_vm5, %v442_v33  ;;  %s1109_s8 = smov 44   ;;  %s1110_s12 = smov 80  }
 0x1b2   : > { %446 = vrot.lane.b32.xlu1 %v442_v33, %s1095_s13  ;;  %s1111_s13 = smov 112  }
 0x1b6   : > { %v440_v34 = vpop.f32.mrf.mxu0 }
 0x1b9   : > { %514 = vrot.lane.b32.xlu0 %v442_v33, %s1096_s24  ;;  %461 = vrot.lane.b32.xlu2 %v442_v33, %s1097_s14  ;;  %s1112_s24 = smov 104   ;;  %s1113_s14 = smov 76  }
 0x1ba   : > { %450 = vrot.lane.b32.xlu1 %v442_v33, %s1098_s15  ;;  %s1114_s15 = smov 68  }
 0x1c1   : > { %562 = vrot.lane.b32.xlu0 %v442_v33, %s1099_s16  ;;  %477 = vrot.lane.b32.xlu2 %v442_v33, %s1100_s17  ;;  %s1115_s16 = smov 100  }
 0x1c2   : > { %472 = vrot.lane.b32.xlu1 %v442_v33, %s1101_s18 }
 0x1c9   : > { %520 = vrot.lane.b32.xlu0 %v442_v33, %s1102_s20  ;;  %488 = vrot.lane.b32.xlu2 %v442_v33, %s1103_s30  ;;  %s1269_s20 = scalar_lea.vmem %s1360_s5, %s1253_s9 }
 0x1ca   : > { %482 = vrot.lane.b32.xlu1 %v442_v33, %s1104_s11 }
 0x1d1   : > { %541 = vrot.lane.b32.xlu0 %v442_v33, %s1105_s28  ;;  %498 = vrot.lane.b32.xlu2 %v442_v33, %s1106_s29  ;;  %s1279_s28 = scalar_lea.vmem %s1361_s6, %s1253_s9 }
 0x1d2   : > { %493 = vrot.lane.b32.xlu1 %v442_v33, %s1107_s21 }
 0x1d9   : > { %546 = vrot.lane.b32.xlu2 %v442_v33, %s1108_s27 }
 0x1da   : > { %530 = vrot.lane.b32.xlu1 %v442_v33, %s1109_s8 }
 0x1e1   : > { %509 = vrot.lane.b32.xlu2 %v442_v33, %s1110_s12 }
 0x1e2   : > { %504 = vrot.lane.b32.xlu1 %v442_v33, %s1111_s13 }
 0x1e9   : > { %536 = vrot.lane.b32.xlu2 %v442_v33, %s1112_s24 }
 0x1ea   : > { %525 = vrot.lane.b32.xlu1 %v442_v33, %s1113_s14 }
 0x1f1   : > { %557 = vrot.lane.b32.xlu2 %v442_v33, %s1114_s15 }
 0x1f2   : > { %552 = vrot.lane.b32.xlu1 %v442_v33, %s1115_s16 }
 0x20b   : > { %v457_v35 = vpop.permute.xlu2 %456 }
 0x20c   : > { %798 = vst.msk [vmem:[%s1259_s7 + $0x4] sm:$0xf] %vm443_vm5, %v457_v35 }
 0x213   : > { %v462_v36 = vpop.permute.xlu2 %461 }
 0x214   : > { %799 = vst.msk [vmem:[%s1269_s20 + $0x4] sm:$0xf] %vm443_vm5, %v462_v36 }
 0x21b   : > { %v478_v37 = vpop.permute.xlu2 %477 }
 0x21c   : > { %803 = vst.msk [vmem:[%s1269_s20 + $0x8] sm:$0xf] %vm443_vm5, %v478_v37 }
 0x223   : > { %v467_v38 = vpop.permute.xlu0 %466  ;;  %v489_v39 = vpop.permute.xlu2 %488 }
 0x224   : > { %800 = vst.msk [vmem:[%s1279_s28 + $0x4] sm:$0xf] %vm443_vm5, %v467_v38  ;;  %v447_v40 = vpop.permute.xlu1 %446 }
 0x225   : > { %801 = vst.msk [vmem:[%s1279_s28 + $0x4] sm:$0xf] %vm454_vm6, %v1116_v41 }
 0x226   : > { %806 = vst.msk [vmem:[%s1259_s7 + $0xc] sm:$0xf] %vm443_vm5, %v489_v39 }
 0x227   : > { %449 = vst.msk [vmem:[%s1269_s20] sm:$0xf] %vm443_vm5, %v447_v40 }
 0x22b   : > { %v515_v42 = vpop.permute.xlu0 %514  ;;  %v499_v43 = vpop.permute.xlu2 %498 }
 0x22c   : > { %812 = vst.msk [vmem:[%s1279_s28 + $0x10] sm:$0xf] %vm443_vm5, %v515_v42  ;;  %v451_v44 = vpop.permute.xlu1 %450 }
 0x22d   : > { %813 = vst.msk [vmem:[%s1279_s28 + $0x10] sm:$0xf] %vm454_vm6, %v1116_v41 }
 0x22e   : > { %808 = vst.msk [vmem:[%s1279_s28 + $0xc] sm:$0xf] %vm443_vm5, %v499_v43 }
 0x22f   : > { %809 = vst.msk [vmem:[%s1279_s28 + $0xc] sm:$0xf] %vm454_vm6, %v1116_v41 }
 0x230   : > { %453 = vst.msk [vmem:[%s1279_s28] sm:$0xf] %vm443_vm5, %v451_v44 }
 0x231   : > { %455 = vst.msk [vmem:[%s1279_s28] sm:$0xf] %vm454_vm6, %v1116_v41 }
 0x233   : > { %v563_v45 = vpop.permute.xlu0 %562  ;;  %v547_v46 = vpop.permute.xlu2 %546 }
 0x234   : > { %824 = vst.msk [vmem:[%s1279_s28 + $0x1c] sm:$0xf] %vm443_vm5, %v563_v45  ;;  %v473_v47 = vpop.permute.xlu1 %472 }
 0x235   : > { %825 = vst.msk [vmem:[%s1279_s28 + $0x1c] sm:$0xf] %vm454_vm6, %v1116_v41 }
 0x236   : > { %820 = vst.msk [vmem:[%s1279_s28 + $0x18] sm:$0xf] %vm443_vm5, %v547_v46 }
 0x237   : > { %821 = vst.msk [vmem:[%s1279_s28 + $0x18] sm:$0xf] %vm454_vm6, %v1116_v41 }
 0x238   : > { %802 = vst.msk [vmem:[%s1259_s7 + $0x8] sm:$0xf] %vm443_vm5, %v473_v47 }
 0x23b   : > { %v521_v48 = vpop.permute.xlu0 %520  ;;  %v510_v49 = vpop.permute.xlu2 %509 }
 0x23c   : > { %814 = vst.msk [vmem:[%s1259_s7 + $0x14] sm:$0xf] %vm443_vm5, %v521_v48  ;;  %v483_v50 = vpop.permute.xlu1 %482 }
 0x23d   : > { %811 = vst.msk [vmem:[%s1269_s20 + $0x10] sm:$0xf] %vm443_vm5, %v510_v49 }
 0x23e   : > { %804 = vst.msk [vmem:[%s1279_s28 + $0x8] sm:$0xf] %vm443_vm5, %v483_v50 }
 0x23f   : > { %805 = vst.msk [vmem:[%s1279_s28 + $0x8] sm:$0xf] %vm454_vm6, %v1116_v41 }
 0x243   : > { %v542_v51 = vpop.permute.xlu0 %541  ;;  %v537_v52 = vpop.permute.xlu2 %536 }
 0x244   : > { %819 = vst.msk [vmem:[%s1269_s20 + $0x18] sm:$0xf] %vm443_vm5, %v542_v51  ;;  %v494_v53 = vpop.permute.xlu1 %493 }
 0x245   : > { %818 = vst.msk [vmem:[%s1259_s7 + $0x18] sm:$0xf] %vm443_vm5, %v537_v52 }
 0x246   : > { %807 = vst.msk [vmem:[%s1269_s20 + $0xc] sm:$0xf] %vm443_vm5, %v494_v53 }
 0x24b   : > { %v558_v54 = vpop.permute.xlu2 %557 }
 0x24c   : > { %823 = vst.msk [vmem:[%s1269_s20 + $0x1c] sm:$0xf] %vm443_vm5, %v558_v54  ;;  %v531_v55 = vpop.permute.xlu1 %530 }
 0x24d   : > { %816 = vst.msk [vmem:[%s1279_s28 + $0x14] sm:$0xf] %vm443_vm5, %v531_v55 }
 0x24e   : > { %817 = vst.msk [vmem:[%s1279_s28 + $0x14] sm:$0xf] %vm454_vm6, %v1116_v41 }
 0x254   : > { %v505_v56 = vpop.permute.xlu1 %504 }
 0x255   : > { %810 = vst.msk [vmem:[%s1259_s7 + $0x10] sm:$0xf] %vm443_vm5, %v505_v56 }
 0x25c   : > { %v526_v57 = vpop.permute.xlu1 %525 }
 0x25d   : > { %815 = vst.msk [vmem:[%s1269_s20 + $0x14] sm:$0xf] %vm443_vm5, %v526_v57 }
 0x264   : > { %v553_v58 = vpop.permute.xlu1 %552 }
 0x265   : > { %822 = vst.msk [vmem:[%s1259_s7 + $0x1c] sm:$0xf] %vm443_vm5, %v553_v58 }
 0x266 PF: > { %s21_s26 = sadd.s32 1, %s1086_s26   ;;  %s1366_s21 = smov %s1070_s22 }
 0x267   : > { %p18_p2 = scmp.ge.s32.totalorder %s21_s26, 4   ;;  %s1367_s22 = smov %s1074_s23 }
 0x268   : > { %s1368_s23 = smov %s1225_s10  ;;  %s1369_s24 = smov %s1082_s25 }
 0x269   : > { %s1370_s25 = smov %s1372_s19  ;;  %20 = sbr.rel (!%p18_p2) target bundleno = 5 (0x5), region = 129 }
 0x26e   :  { %639 = vsyncpa [#allocation3], 1 }
 0x26f   :  { %641 = vsyncpa [#allocation3 + $0x1], 1 }
 0x270   :  { %642 = vsyncpa [#allocation5], 1 }

</bundles_post_ra>
